<compile_context>
chip_gen: v7x
topology: tpu7x:2x2x1
jax: 0.10.0
libtpu: 0.0.40
codegen_flags: <defaults>
</compile_context>

<pallas_src>
import functools
import math

import jax
import jax.numpy as jnp
from jax.experimental import pallas as pl
from jax.experimental.pallas import tpu as pltpu

LN_EPS = 1e-5

# Set to jnp.bfloat16 on v6e/v7x for ~2x MXU throughput and half the weight/activation
# DMA bytes (f32 accumulation is retained). Kept f32 so the 1e-4 reference check holds.
MXU_DTYPE = jnp.float32


def _mxu_dot(a, b):
    return jnp.dot(a.astype(MXU_DTYPE), b.astype(MXU_DTYPE),
                   preferred_element_type=jnp.float32)


def _vmem_limit_bytes(shapes, itemsize=4):
    """Scoped-VMEM request sized from the tile footprint (x2 for double-buffering
    + 1 MiB headroom), clamped to stay inside every generation's physical VMEM
    (v7x: 64 MiB per TensorCore)."""
    total = sum(math.prod(s) for s in shapes) * itemsize
    return int(min(48 * 1024 * 1024, max(4 * 1024 * 1024, 2 * total + (1 << 20))))


def _row_tile(M, target=512):
    """Largest row tile <= target that divides M and yields >= 2 grid steps
    (enables pipelining and megacore sharding on v7x); falls back to one full
    block for tiny M. Tiles are multiples of 8 (sublane rule)."""
    for t in (512, 256, 128, 64, 32, 16, 8):
        if t <= target and t < M and M % t == 0:
            return t
    return M


# ----------------------------- Pallas kernels -----------------------------

def _qkv_kernel(x_ref, w_ref, b_ref, o_ref):
    # x: (tm, D), w: (D, 3D) (VMEM-resident across the row grid), b: (1, 3D)
    o_ref[...] = (_mxu_dot(x_ref[...], w_ref[...]) + b_ref[...]).astype(o_ref.dtype)


def _mha_kernel(q_ref, k_ref, v_ref, o_ref, *, scale):
    # One grid step = all heads of one batch: blocks are (H, L, Dh).
    q = q_ref[...]
    k = k_ref[...]
    v = v_ref[...]
    # Batched over heads, contracting the last dims -> no explicit k.T / XLU transpose.
    s = jax.lax.dot_general(
        q.astype(MXU_DTYPE), k.astype(MXU_DTYPE),
        dimension_numbers=(((2,), (2,)), ((0,), (0,))),
        preferred_element_type=jnp.float32) * scale            # (H, L, L)
    s = s - jnp.max(s, axis=-1, keepdims=True)
    p = jnp.exp(s)
    denom = jnp.sum(p, axis=-1, keepdims=True)
    # approx=True would move the divide to the EUP (its own VLIW slot), but its
    # approximation error exceeds this demo's 1e-4 check; flip on for prod runs.
    p = p * pl.reciprocal(denom, approx=False)
    ctx = jax.lax.dot_general(
        p.astype(MXU_DTYPE), v.astype(MXU_DTYPE),
        dimension_numbers=(((2,), (1,)), ((0,), (0,))),
        preferred_element_type=jnp.float32)                    # (H, L, Dh)
    o_ref[...] = ctx.astype(o_ref.dtype)


def _proj_add_ln_kernel(c_ref, w_ref, b_ref, x_ref, g_ref, be_ref, o_ref, *, eps):
    # out = LayerNorm(c @ w + b + x)   (attention out-proj + residual + LN, fused)
    y = _mxu_dot(c_ref[...], w_ref[...]) + b_ref[...] + x_ref[...]
    mu = jnp.mean(y, axis=-1, keepdims=True)
    var = jnp.mean((y - mu) ** 2, axis=-1, keepdims=True)
    o_ref[...] = ((y - mu) * jax.lax.rsqrt(var + eps) * g_ref[...]
                  + be_ref[...]).astype(o_ref.dtype)


def _ffn_kernel(x_ref, w1_ref, b1_ref, w2_ref, b2_ref, g_ref, be_ref, o_ref, *, eps):
    # out = LayerNorm(relu(x @ w1 + b1) @ w2 + b2 + x)
    # NOTE: for large hidden dims (H = 4D, D >= 1024) add a grid axis over H with an
    # f32 accumulator + pl.when init/finalize; unnecessary at these weight sizes.
    x = x_ref[...]
    h = jnp.maximum(_mxu_dot(x, w1_ref[...]) + b1_ref[...], 0.0)
    y = _mxu_dot(h, w2_ref[...]) + b2_ref[...] + x
    mu = jnp.mean(y, axis=-1, keepdims=True)
    var = jnp.mean((y - mu) ** 2, axis=-1, keepdims=True)
    o_ref[...] = ((y - mu) * jax.lax.rsqrt(var + eps) * g_ref[...]
                  + be_ref[...]).astype(o_ref.dtype)


# ----------------------------- pallas_call wrappers -----------------------------

def fused_qkv_proj(x2d, wqkv, bqkv):
    M, D = x2d.shape
    N = wqkv.shape[1]                       # 3*D
    tm = _row_tile(M)
    vmem = _vmem_limit_bytes([(tm, D), (D, N), (1, N), (tm, N)])
    return pl.pallas_call(
        _qkv_kernel,
        out_shape=jax.ShapeDtypeStruct((M, N), x2d.dtype),
        grid=(pl.cdiv(M, tm),),
        in_specs=[pl.BlockSpec((tm, D), lambda i: (i, 0)),
                  pl.BlockSpec((D, N), lambda i: (0, 0)),    # weight stays VMEM-resident
                  pl.BlockSpec((1, N), lambda i: (0, 0))],
        out_specs=pl.BlockSpec((tm, N), lambda i: (i, 0)),
        compiler_params=pltpu.CompilerParams(
            dimension_semantics=("parallel",), vmem_limit_bytes=vmem),
    )(x2d, wqkv, bqkv.reshape(1, N))


def mha_attention(Q, K, V, scale, num_head):
    # Q, K, V: (B*H, L, Dh); one grid step per batch (all H heads at once).
    BH, L, Dh = Q.shape
    B = BH // num_head
    kern = functools.partial(_mha_kernel, scale=scale)
    spec = pl.BlockSpec((num_head, L, Dh), lambda b: (b, 0, 0))
    vmem = _vmem_limit_bytes([(num_head, L, Dh)] * 4 + [(num_head, L, L)] * 2)
    return pl.pallas_call(
        kern,
        out_shape=jax.ShapeDtypeStruct((BH, L, Dh), Q.dtype),
        grid=(B,),
        in_specs=[spec, spec, spec],
        out_specs=spec,
        compiler_params=pltpu.CompilerParams(
            dimension_semantics=("parallel",), vmem_limit_bytes=vmem),
    )(Q, K, V)


def proj_add_layernorm(ctx2d, wo, bo, x2d, gamma, beta):
    M, D = x2d.shape
    tm = _row_tile(M)
    kern = functools.partial(_proj_add_ln_kernel, eps=LN_EPS)
    vmem = _vmem_limit_bytes([(tm, D)] * 3 + [(D, D)] + [(1, D)] * 3)
    return pl.pallas_call(
        kern,
        out_shape=jax.ShapeDtypeStruct((M, D), x2d.dtype),
        grid=(pl.cdiv(M, tm),),
        in_specs=[pl.BlockSpec((tm, D), lambda i: (i, 0)),
                  pl.BlockSpec((D, D), lambda i: (0, 0)),
                  pl.BlockSpec((1, D), lambda i: (0, 0)),
                  pl.BlockSpec((tm, D), lambda i: (i, 0)),
                  pl.BlockSpec((1, D), lambda i: (0, 0)),
                  pl.BlockSpec((1, D), lambda i: (0, 0))],
        out_specs=pl.BlockSpec((tm, D), lambda i: (i, 0)),
        compiler_params=pltpu.CompilerParams(
            dimension_semantics=("parallel",), vmem_limit_bytes=vmem),
    )(ctx2d, wo, bo.reshape(1, D), x2d, gamma.reshape(1, D), beta.reshape(1, D))


def ffn_add_layernorm(x2d, w1, b1, w2, b2, gamma, beta):
    M, D = x2d.shape
    H = w1.shape[1]
    tm = _row_tile(M)
    kern = functools.partial(_ffn_kernel, eps=LN_EPS)
    vmem = _vmem_limit_bytes([(tm, D)] * 2 + [(D, H), (H, D), (tm, H), (1, H)]
                             + [(1, D)] * 3)
    return pl.pallas_call(
        kern,
        out_shape=jax.ShapeDtypeStruct((M, D), x2d.dtype),
        grid=(pl.cdiv(M, tm),),
        in_specs=[pl.BlockSpec((tm, D), lambda i: (i, 0)),
                  pl.BlockSpec((D, H), lambda i: (0, 0)),
                  pl.BlockSpec((1, H), lambda i: (0, 0)),
                  pl.BlockSpec((H, D), lambda i: (0, 0)),
                  pl.BlockSpec((1, D), lambda i: (0, 0)),
                  pl.BlockSpec((1, D), lambda i: (0, 0)),
                  pl.BlockSpec((1, D), lambda i: (0, 0))],
        out_specs=pl.BlockSpec((tm, D), lambda i: (i, 0)),
        compiler_params=pltpu.CompilerParams(
            dimension_semantics=("parallel",), vmem_limit_bytes=vmem),
    )(x2d, w1, b1.reshape(1, H), w2, b2.reshape(1, D),
      gamma.reshape(1, D), beta.reshape(1, D))


# ----------------------------- Encoder forward -----------------------------

@functools.partial(jax.jit, static_argnums=2)
def encoder_forward(x, params, num_head):
    B, L, D = x.shape
    dim_head = D // num_head
    M = B * L
    x2d = x.reshape(M, D)

    # Fused Q|K|V projection: one (D, 3D) matmul so x is streamed from HBM once.
    wqkv = jnp.concatenate([params["wq"], params["wk"], params["wv"]], axis=1)
    bqkv = jnp.concatenate([params["bq"], params["bk"], params["bv"]], axis=0)
    qkv = fused_qkv_proj(x2d, wqkv, bqkv)                      # (M, 3D)
    q2d, k2d, v2d = qkv[:, :D], qkv[:, D:2 * D], qkv[:, 2 * D:]

    # Exactly replicate torch's `view(batch_size * num_head, -1, dim_head)`
    # (raw row-major reshape of a contiguous tensor -- NOT a head transpose).
    Q = q2d.reshape(B * num_head, -1, dim_head)
    K = k2d.reshape(B * num_head, -1, dim_head)
    V = v2d.reshape(B * num_head, -1, dim_head)

    scale = float(dim_head) ** (-0.5)
    ctx = mha_attention(Q, K, V, scale, num_head)              # (B*H, L, Dh)
    ctx2d = ctx.reshape(B, -1, dim_head * num_head).reshape(M, D)

    # output projection + residual + LayerNorm (fused Pallas kernel)
    out1 = proj_add_layernorm(ctx2d, params["wo"], params["bo"], x2d,
                              params["ln1_g"], params["ln1_b"])
    # position-wise FFN + residual + LayerNorm (fused Pallas kernel)
    out2 = ffn_add_layernorm(out1, params["w1"], params["b1"],
                             params["w2"], params["b2"],
                             params["ln2_g"], params["ln2_b"])
    return out2.reshape(B, L, D)


# ----------------------------- reference (pure JAX) -----------------------------

def encoder_reference(x, params, num_head):
    B, L, D = x.shape
    dim_head = D // num_head
    x2d = x.reshape(B * L, D)
    Q = (x2d @ params["wq"] + params["bq"]).reshape(B, L, D)
    K = (x2d @ params["wk"] + params["bk"]).reshape(B, L, D)
    V = (x2d @ params["wv"] + params["bv"]).reshape(B, L, D)
    Q = Q.reshape(B * num_head, -1, dim_head)
    K = K.reshape(B * num_head, -1, dim_head)
    V = V.reshape(B * num_head, -1, dim_head)
    scale = float(dim_head) ** (-0.5)
    att = jnp.einsum("bqd,bkd->bqk", Q, K) * scale
    att = jax.nn.softmax(att, axis=-1)
    ctx = jnp.einsum("bqk,bkd->bqd", att, V).reshape(B, -1, D).reshape(B * L, D)
    y = ctx @ params["wo"] + params["bo"] + x2d
    mu = jnp.mean(y, -1, keepdims=True)
    var = jnp.mean((y - mu) ** 2, -1, keepdims=True)
    out1 = (y - mu) * jax.lax.rsqrt(var + LN_EPS) * params["ln1_g"] + params["ln1_b"]
    h = jnp.maximum(out1 @ params["w1"] + params["b1"], 0.0)
    y2 = h @ params["w2"] + params["b2"] + out1
    mu2 = jnp.mean(y2, -1, keepdims=True)
    var2 = jnp.mean((y2 - mu2) ** 2, -1, keepdims=True)
    out2 = (y2 - mu2) * jax.lax.rsqrt(var2 + LN_EPS) * params["ln2_g"] + params["ln2_b"]
    return out2.reshape(B, L, D)


# ----------------------------- main -----------------------------

def make_params(key, dim_model, hidden):
    ks = jax.random.split(key, 8)
    s = 0.1
    return {
        "wq": s * jax.random.normal(ks[0], (dim_model, dim_model), jnp.float32),
        "bq": s * jax.random.normal(ks[1], (dim_model,), jnp.float32),
        "wk": s * jax.random.normal(ks[2], (dim_model, dim_model), jnp.float32),
        "bk": s * jax.random.normal(ks[3], (dim_model,), jnp.float32),
        "wv": s * jax.random.normal(ks[4], (dim_model, dim_model), jnp.float32),
        "bv": s * jax.random.normal(ks[5], (dim_model,), jnp.float32),
        "wo": s * jax.random.normal(ks[6], (dim_model, dim_model), jnp.float32),
        "bo": s * jax.random.normal(ks[7], (dim_model,), jnp.float32),
        "ln1_g": jnp.ones((dim_model,), jnp.float32),
        "ln1_b": jnp.zeros((dim_model,), jnp.float32),
        "w1": s * jax.random.normal(jax.random.PRNGKey(101), (dim_model, hidden), jnp.float32),
        "b1": s * jax.random.normal(jax.random.PRNGKey(102), (hidden,), jnp.float32),
        "w2": s * jax.random.normal(jax.random.PRNGKey(103), (hidden, dim_model), jnp.float32),
        "b2": s * jax.random.normal(jax.random.PRNGKey(104), (dim_model,), jnp.float32),
        "ln2_g": jnp.ones((dim_model,), jnp.float32),
        "ln2_b": jnp.zeros((dim_model,), jnp.float32),
    }


if __name__ == "__main__":
    # small shapes consistent with the module: batch=2, seq=8, dim_model=32, heads=4, hidden=64
    B, L, D, H, HID = 2, 8, 32, 4, 64
    key = jax.random.PRNGKey(0)
    kx, kp = jax.random.split(key)
    x = jax.random.normal(kx, (B, L, D), jnp.float32)
    params = make_params(kp, D, HID)

    out = jax.block_until_ready(encoder_forward(x, params, H))
    ref = jax.block_until_ready(encoder_reference(x, params, H))
    assert out.shape == (B, L, D)
    assert jnp.allclose(out, ref, atol=1e-4, rtol=1e-4), "mismatch vs JAX reference"
    print("KERNEL_OK")
</pallas_src>

<mosaic_0001>
module attributes {stable_mosaic.version = 11 : i64} {
  func.func @_qkv_kernel(%arg0: i32, %arg1: memref<8x32xf32, #tpu.memory_space<vmem>>, %arg2: memref<32x96xf32, #tpu.memory_space<vmem>>, %arg3: memref<1x96xf32, #tpu.memory_space<vmem>>, %arg4: memref<8x96xf32, #tpu.memory_space<vmem>>) attributes {dimension_semantics = [#tpu.dimension_semantics<parallel>], iteration_bounds = array<i64: 2>, scalar_prefetch = 0 : i64, scratch_operands = 0 : i64, tpu.core_type = #tpu.core_type<tc>, window_params = [{transform_indices = @transform_0, window_bounds = array<i64: 8, 32>}, {pipeline_mode = #tpu.pipeline_mode<synchronous>, transform_indices = @transform_1, window_bounds = array<i64: 32, 96>}, {pipeline_mode = #tpu.pipeline_mode<synchronous>, transform_indices = @transform_2, window_bounds = array<i64: 1, 96>}, {transform_indices = @transform_3, window_bounds = array<i64: 8, 96>}]} {
    %c0 = arith.constant 0 : index
    %c0_0 = arith.constant 0 : index
    %0 = vector.load %arg1[%c0, %c0_0] : memref<8x32xf32, #tpu.memory_space<vmem>>, vector<8x32xf32>
    %c0_1 = arith.constant 0 : index
    %c0_2 = arith.constant 0 : index
    %1 = vector.load %arg2[%c0_1, %c0_2] : memref<32x96xf32, #tpu.memory_space<vmem>>, vector<32x96xf32>
    %cst = arith.constant dense<0.000000e+00> : vector<8x96xf32>
    %2 = tpu.matmul %0, %1, %cst {dimension_numbers = #tpu.dot_dimension_numbers<[1], [0], [0], [1], [0, 0, 1, 1], [], []>} : vector<8x32xf32>, vector<32x96xf32>, vector<8x96xf32> -> vector<8x96xf32>
    %c0_3 = arith.constant 0 : index
    %c0_4 = arith.constant 0 : index
    %3 = vector.load %arg3[%c0_3, %c0_4] : memref<1x96xf32, #tpu.memory_space<vmem>>, vector<1x96xf32>
    %4 = vector.broadcast %3 : vector<1x96xf32> to vector<8x96xf32>
    %5 = arith.addf %2, %4 : vector<8x96xf32>
    %c0_5 = arith.constant 0 : index
    %c0_6 = arith.constant 0 : index
    %6 = vector.load %arg4[%c0_5, %c0_6] : memref<8x96xf32, #tpu.memory_space<vmem>>, vector<8x96xf32>
    tpu.vector_store %arg4[%c0_5, %c0_6], %5 {strides = array<i32>} : memref<8x96xf32, #tpu.memory_space<vmem>>, vector<8x96xf32>,
    return
  }
  func.func @transform_0(%arg0: i32) -> (i32, i32) {
    %c0_i32 = arith.constant 0 : i32
    %c0_i32_0 = arith.constant 0 : i32
    return %arg0, %c0_i32 : i32, i32
  }
  func.func @transform_1(%arg0: i32) -> (i32, i32) {
    %c0_i32 = arith.constant 0 : i32
    %c0_i32_0 = arith.constant 0 : i32
    %c0_i32_1 = arith.constant 0 : i32
    return %c0_i32, %c0_i32_0 : i32, i32
  }
  func.func @transform_2(%arg0: i32) -> (i32, i32) {
    %c0_i32 = arith.constant 0 : i32
    %c0_i32_0 = arith.constant 0 : i32
    %c0_i32_1 = arith.constant 0 : i32
    return %c0_i32, %c0_i32_0 : i32, i32
  }
  func.func @transform_3(%arg0: i32) -> (i32, i32) {
    %c0_i32 = arith.constant 0 : i32
    %c0_i32_0 = arith.constant 0 : i32
    return %arg0, %c0_i32 : i32, i32
  }
}

module attributes {stable_mosaic.version = 11 : i64} {
  func.func @_mha_kernel(%arg0: i32, %arg1: memref<4x8x8xf32, #tpu.memory_space<vmem>>, %arg2: memref<4x8x8xf32, #tpu.memory_space<vmem>>, %arg3: memref<4x8x8xf32, #tpu.memory_space<vmem>>, %arg4: memref<4x8x8xf32, #tpu.memory_space<vmem>>) attributes {dimension_semantics = [#tpu.dimension_semantics<parallel>], iteration_bounds = array<i64: 2>, scalar_prefetch = 0 : i64, scratch_operands = 0 : i64, tpu.core_type = #tpu.core_type<tc>, window_params = [{transform_indices = @transform_0, window_bounds = array<i64: 4, 8, 8>}, {transform_indices = @transform_1, window_bounds = array<i64: 4, 8, 8>}, {transform_indices = @transform_2, window_bounds = array<i64: 4, 8, 8>}, {transform_indices = @transform_3, window_bounds = array<i64: 4, 8, 8>}]} {
    %c0 = arith.constant 0 : index
    %c0_0 = arith.constant 0 : index
    %c0_1 = arith.constant 0 : index
    %0 = vector.load %arg1[%c0, %c0_0, %c0_1] : memref<4x8x8xf32, #tpu.memory_space<vmem>>, vector<4x8x8xf32>
    %c0_2 = arith.constant 0 : index
    %c0_3 = arith.constant 0 : index
    %c0_4 = arith.constant 0 : index
    %1 = vector.load %arg2[%c0_2, %c0_3, %c0_4] : memref<4x8x8xf32, #tpu.memory_space<vmem>>, vector<4x8x8xf32>
    %c0_5 = arith.constant 0 : index
    %c0_6 = arith.constant 0 : index
    %c0_7 = arith.constant 0 : index
    %2 = vector.load %arg3[%c0_5, %c0_6, %c0_7] : memref<4x8x8xf32, #tpu.memory_space<vmem>>, vector<4x8x8xf32>
    %cst = arith.constant dense<0.000000e+00> : vector<4x8x8xf32>
    %3 = tpu.matmul %0, %1, %cst {dimension_numbers = #tpu.dot_dimension_numbers<[2], [2], [1], [1], [0, 0, 0, 1, 1, 1], [0], [0]>} : vector<4x8x8xf32>, vector<4x8x8xf32>, vector<4x8x8xf32> -> vector<4x8x8xf32>
    %cst_8 = arith.constant 0.353553385 : f32
    %4 = vector.broadcast %cst_8 : f32 to vector<4x8x8xf32>
    %5 = arith.mulf %3, %4 : vector<4x8x8xf32>
    %cst_9 = arith.constant dense<0xFF800000> : vector<4x8xf32>
    %6 = vector.multi_reduction <maximumf>, %5, %cst_9 [2] : vector<4x8x8xf32> to vector<4x8xf32>
    %7 = vector.shape_cast %6 : vector<4x8xf32> to vector<4x8x1xf32>
    %8 = vector.broadcast %7 : vector<4x8x1xf32> to vector<4x8x8xf32>
    %9 = arith.subf %5, %8 : vector<4x8x8xf32>
    %10 = math.exp %9 : vector<4x8x8xf32>
    %cst_10 = arith.constant dense<0.000000e+00> : vector<4x8xf32>
    %11 = vector.multi_reduction <add>, %10, %cst_10 [2] : vector<4x8x8xf32> to vector<4x8xf32>
    %12 = vector.shape_cast %11 : vector<4x8xf32> to vector<4x8x1xf32>
    %13 = tpu.reciprocal %12 : vector<4x8x1xf32> -> vector<4x8x1xf32>
    %14 = vector.broadcast %13 : vector<4x8x1xf32> to vector<4x8x8xf32>
    %15 = arith.mulf %10, %14 : vector<4x8x8xf32>
    %cst_11 = arith.constant dense<0.000000e+00> : vector<4x8x8xf32>
    %16 = tpu.matmul %15, %2, %cst_11 {dimension_numbers = #tpu.dot_dimension_numbers<[2], [1], [1], [2], [0, 0, 0, 1, 1, 2], [0], [0]>} : vector<4x8x8xf32>, vector<4x8x8xf32>, vector<4x8x8xf32> -> vector<4x8x8xf32>
    %c0_12 = arith.constant 0 : index
    %c0_13 = arith.constant 0 : index
    %c0_14 = arith.constant 0 : index
    %17 = vector.load %arg4[%c0_12, %c0_13, %c0_14] : memref<4x8x8xf32, #tpu.memory_space<vmem>>, vector<4x8x8xf32>
    tpu.vector_store %arg4[%c0_12, %c0_13, %c0_14], %16 {strides = array<i32>} : memref<4x8x8xf32, #tpu.memory_space<vmem>>, vector<4x8x8xf32>,
    return
  }
  func.func @transform_0(%arg0: i32) -> (i32, i32, i32) {
    %c0_i32 = arith.constant 0 : i32
    %c0_i32_0 = arith.constant 0 : i32
    %c0_i32_1 = arith.constant 0 : i32
    return %arg0, %c0_i32, %c0_i32_0 : i32, i32, i32
  }
  func.func @transform_1(%arg0: i32) -> (i32, i32, i32) {
    %c0_i32 = arith.constant 0 : i32
    %c0_i32_0 = arith.constant 0 : i32
    %c0_i32_1 = arith.constant 0 : i32
    return %arg0, %c0_i32, %c0_i32_0 : i32, i32, i32
  }
  func.func @transform_2(%arg0: i32) -> (i32, i32, i32) {
    %c0_i32 = arith.constant 0 : i32
    %c0_i32_0 = arith.constant 0 : i32
    %c0_i32_1 = arith.constant 0 : i32
    return %arg0, %c0_i32, %c0_i32_0 : i32, i32, i32
  }
  func.func @transform_3(%arg0: i32) -> (i32, i32, i32) {
    %c0_i32 = arith.constant 0 : i32
    %c0_i32_0 = arith.constant 0 : i32
    %c0_i32_1 = arith.constant 0 : i32
    return %arg0, %c0_i32, %c0_i32_0 : i32, i32, i32
  }
}

module attributes {stable_mosaic.version = 11 : i64} {
  func.func @_proj_add_ln_kernel(%arg0: i32, %arg1: memref<8x32xf32, #tpu.memory_space<vmem>>, %arg2: memref<32x32xf32, #tpu.memory_space<vmem>>, %arg3: memref<1x32xf32, #tpu.memory_space<vmem>>, %arg4: memref<8x32xf32, #tpu.memory_space<vmem>>, %arg5: memref<1x32xf32, #tpu.memory_space<vmem>>, %arg6: memref<1x32xf32, #tpu.memory_space<vmem>>, %arg7: memref<8x32xf32, #tpu.memory_space<vmem>>) attributes {dimension_semantics = [#tpu.dimension_semantics<parallel>], iteration_bounds = array<i64: 2>, scalar_prefetch = 0 : i64, scratch_operands = 0 : i64, tpu.core_type = #tpu.core_type<tc>, window_params = [{transform_indices = @transform_0, window_bounds = array<i64: 8, 32>}, {pipeline_mode = #tpu.pipeline_mode<synchronous>, transform_indices = @transform_1, window_bounds = array<i64: 32, 32>}, {pipeline_mode = #tpu.pipeline_mode<synchronous>, transform_indices = @transform_2, window_bounds = array<i64: 1, 32>}, {transform_indices = @transform_3, window_bounds = array<i64: 8, 32>}, {pipeline_mode = #tpu.pipeline_mode<synchronous>, transform_indices = @transform_4, window_bounds = array<i64: 1, 32>}, {pipeline_mode = #tpu.pipeline_mode<synchronous>, transform_indices = @transform_5, window_bounds = array<i64: 1, 32>}, {transform_indices = @transform_6, window_bounds = array<i64: 8, 32>}]} {
    %c0 = arith.constant 0 : index
    %c0_0 = arith.constant 0 : index
    %0 = vector.load %arg1[%c0, %c0_0] : memref<8x32xf32, #tpu.memory_space<vmem>>, vector<8x32xf32>
    %c0_1 = arith.constant 0 : index
    %c0_2 = arith.constant 0 : index
    %1 = vector.load %arg2[%c0_1, %c0_2] : memref<32x32xf32, #tpu.memory_space<vmem>>, vector<32x32xf32>
    %cst = arith.constant dense<0.000000e+00> : vector<8x32xf32>
    %2 = tpu.matmul %0, %1, %cst {dimension_numbers = #tpu.dot_dimension_numbers<[1], [0], [0], [1], [0, 0, 1, 1], [], []>} : vector<8x32xf32>, vector<32x32xf32>, vector<8x32xf32> -> vector<8x32xf32>
    %c0_3 = arith.constant 0 : index
    %c0_4 = arith.constant 0 : index
    %3 = vector.load %arg3[%c0_3, %c0_4] : memref<1x32xf32, #tpu.memory_space<vmem>>, vector<1x32xf32>
    %4 = vector.broadcast %3 : vector<1x32xf32> to vector<8x32xf32>
    %5 = arith.addf %2, %4 : vector<8x32xf32>
    %c0_5 = arith.constant 0 : index
    %c0_6 = arith.constant 0 : index
    %6 = vector.load %arg4[%c0_5, %c0_6] : memref<8x32xf32, #tpu.memory_space<vmem>>, vector<8x32xf32>
    %7 = arith.addf %5, %6 : vector<8x32xf32>
    %cst_7 = arith.constant dense<0.000000e+00> : vector<8xf32>
    %8 = vector.multi_reduction <add>, %7, %cst_7 [1] : vector<8x32xf32> to vector<8xf32>
    %9 = vector.shape_cast %8 : vector<8xf32> to vector<8x1xf32>
    %cst_8 = arith.constant 3.200000e+01 : f32
    %10 = vector.broadcast %cst_8 : f32 to vector<8x1xf32>
    %11 = arith.divf %9, %10 : vector<8x1xf32>
    %12 = vector.broadcast %11 : vector<8x1xf32> to vector<8x32xf32>
    %13 = arith.subf %7, %12 : vector<8x32xf32>
    %14 = arith.mulf %13, %13 : vector<8x32xf32>
    %cst_9 = arith.constant dense<0.000000e+00> : vector<8xf32>
    %15 = vector.multi_reduction <add>, %14, %cst_9 [1] : vector<8x32xf32> to vector<8xf32>
    %16 = vector.shape_cast %15 : vector<8xf32> to vector<8x1xf32>
    %cst_10 = arith.constant 3.200000e+01 : f32
    %17 = vector.broadcast %cst_10 : f32 to vector<8x1xf32>
    %18 = arith.divf %16, %17 : vector<8x1xf32>
    %19 = vector.broadcast %11 : vector<8x1xf32> to vector<8x32xf32>
    %20 = arith.subf %7, %19 : vector<8x32xf32>
    %cst_11 = arith.constant 9.99999974E-6 : f32
    %21 = vector.broadcast %cst_11 : f32 to vector<8x1xf32>
    %22 = arith.addf %18, %21 : vector<8x1xf32>
    %23 = math.rsqrt %22 : vector<8x1xf32>
    %24 = vector.broadcast %23 : vector<8x1xf32> to vector<8x32xf32>
    %25 = arith.mulf %20, %24 : vector<8x32xf32>
    %c0_12 = arith.constant 0 : index
    %c0_13 = arith.constant 0 : index
    %26 = vector.load %arg5[%c0_12, %c0_13] : memref<1x32xf32, #tpu.memory_space<vmem>>, vector<1x32xf32>
    %27 = vector.broadcast %26 : vector<1x32xf32> to vector<8x32xf32>
    %28 = arith.mulf %25, %27 : vector<8x32xf32>
    %c0_14 = arith.constant 0 : index
    %c0_15 = arith.constant 0 : index
    %29 = vector.load %arg6[%c0_14, %c0_15] : memref<1x32xf32, #tpu.memory_space<vmem>>, vector<1x32xf32>
    %30 = vector.broadcast %29 : vector<1x32xf32> to vector<8x32xf32>
    %31 = arith.addf %28, %30 : vector<8x32xf32>
    %c0_16 = arith.constant 0 : index
    %c0_17 = arith.constant 0 : index
    %32 = vector.load %arg7[%c0_16, %c0_17] : memref<8x32xf32, #tpu.memory_space<vmem>>, vector<8x32xf32>
    tpu.vector_store %arg7[%c0_16, %c0_17], %31 {strides = array<i32>} : memref<8x32xf32, #tpu.memory_space<vmem>>, vector<8x32xf32>,
    return
  }
  func.func @transform_0(%arg0: i32) -> (i32, i32) {
    %c0_i32 = arith.constant 0 : i32
    %c0_i32_0 = arith.constant 0 : i32
    return %arg0, %c0_i32 : i32, i32
  }
  func.func @transform_1(%arg0: i32) -> (i32, i32) {
    %c0_i32 = arith.constant 0 : i32
    %c0_i32_0 = arith.constant 0 : i32
    %c0_i32_1 = arith.constant 0 : i32
    return %c0_i32, %c0_i32_0 : i32, i32
  }
  func.func @transform_2(%arg0: i32) -> (i32, i32) {
    %c0_i32 = arith.constant 0 : i32
    %c0_i32_0 = arith.constant 0 : i32
    %c0_i32_1 = arith.constant 0 : i32
    return %c0_i32, %c0_i32_0 : i32, i32
  }
  func.func @transform_3(%arg0: i32) -> (i32, i32) {
    %c0_i32 = arith.constant 0 : i32
    %c0_i32_0 = arith.constant 0 : i32
    return %arg0, %c0_i32 : i32, i32
  }
  func.func @transform_4(%arg0: i32) -> (i32, i32) {
    %c0_i32 = arith.constant 0 : i32
    %c0_i32_0 = arith.constant 0 : i32
    %c0_i32_1 = arith.constant 0 : i32
    return %c0_i32, %c0_i32_0 : i32, i32
  }
  func.func @transform_5(%arg0: i32) -> (i32, i32) {
    %c0_i32 = arith.constant 0 : i32
    %c0_i32_0 = arith.constant 0 : i32
    %c0_i32_1 = arith.constant 0 : i32
    return %c0_i32, %c0_i32_0 : i32, i32
  }
  func.func @transform_6(%arg0: i32) -> (i32, i32) {
    %c0_i32 = arith.constant 0 : i32
    %c0_i32_0 = arith.constant 0 : i32
    return %arg0, %c0_i32 : i32, i32
  }
}

module attributes {stable_mosaic.version = 11 : i64} {
  func.func @_ffn_kernel(%arg0: i32, %arg1: memref<8x32xf32, #tpu.memory_space<vmem>>, %arg2: memref<32x64xf32, #tpu.memory_space<vmem>>, %arg3: memref<1x64xf32, #tpu.memory_space<vmem>>, %arg4: memref<64x32xf32, #tpu.memory_space<vmem>>, %arg5: memref<1x32xf32, #tpu.memory_space<vmem>>, %arg6: memref<1x32xf32, #tpu.memory_space<vmem>>, %arg7: memref<1x32xf32, #tpu.memory_space<vmem>>, %arg8: memref<8x32xf32, #tpu.memory_space<vmem>>) attributes {dimension_semantics = [#tpu.dimension_semantics<parallel>], iteration_bounds = array<i64: 2>, scalar_prefetch = 0 : i64, scratch_operands = 0 : i64, tpu.core_type = #tpu.core_type<tc>, window_params = [{transform_indices = @transform_0, window_bounds = array<i64: 8, 32>}, {pipeline_mode = #tpu.pipeline_mode<synchronous>, transform_indices = @transform_1, window_bounds = array<i64: 32, 64>}, {pipeline_mode = #tpu.pipeline_mode<synchronous>, transform_indices = @transform_2, window_bounds = array<i64: 1, 64>}, {pipeline_mode = #tpu.pipeline_mode<synchronous>, transform_indices = @transform_3, window_bounds = array<i64: 64, 32>}, {pipeline_mode = #tpu.pipeline_mode<synchronous>, transform_indices = @transform_4, window_bounds = array<i64: 1, 32>}, {pipeline_mode = #tpu.pipeline_mode<synchronous>, transform_indices = @transform_5, window_bounds = array<i64: 1, 32>}, {pipeline_mode = #tpu.pipeline_mode<synchronous>, transform_indices = @transform_6, window_bounds = array<i64: 1, 32>}, {transform_indices = @transform_7, window_bounds = array<i64: 8, 32>}]} {
    %c0 = arith.constant 0 : index
    %c0_0 = arith.constant 0 : index
    %0 = vector.load %arg1[%c0, %c0_0] : memref<8x32xf32, #tpu.memory_space<vmem>>, vector<8x32xf32>
    %c0_1 = arith.constant 0 : index
    %c0_2 = arith.constant 0 : index
    %1 = vector.load %arg2[%c0_1, %c0_2] : memref<32x64xf32, #tpu.memory_space<vmem>>, vector<32x64xf32>
    %cst = arith.constant dense<0.000000e+00> : vector<8x64xf32>
    %2 = tpu.matmul %0, %1, %cst {dimension_numbers = #tpu.dot_dimension_numbers<[1], [0], [0], [1], [0, 0, 1, 1], [], []>} : vector<8x32xf32>, vector<32x64xf32>, vector<8x64xf32> -> vector<8x64xf32>
    %c0_3 = arith.constant 0 : index
    %c0_4 = arith.constant 0 : index
    %3 = vector.load %arg3[%c0_3, %c0_4] : memref<1x64xf32, #tpu.memory_space<vmem>>, vector<1x64xf32>
    %4 = vector.broadcast %3 : vector<1x64xf32> to vector<8x64xf32>
    %5 = arith.addf %2, %4 : vector<8x64xf32>
    %cst_5 = arith.constant 0.000000e+00 : f32
    %6 = vector.broadcast %cst_5 : f32 to vector<8x64xf32>
    %7 = arith.maximumf %5, %6 : vector<8x64xf32>
    %c0_6 = arith.constant 0 : index
    %c0_7 = arith.constant 0 : index
    %8 = vector.load %arg4[%c0_6, %c0_7] : memref<64x32xf32, #tpu.memory_space<vmem>>, vector<64x32xf32>
    %cst_8 = arith.constant dense<0.000000e+00> : vector<8x32xf32>
    %9 = tpu.matmul %7, %8, %cst_8 {dimension_numbers = #tpu.dot_dimension_numbers<[1], [0], [0], [1], [0, 0, 1, 1], [], []>} : vector<8x64xf32>, vector<64x32xf32>, vector<8x32xf32> -> vector<8x32xf32>
    %c0_9 = arith.constant 0 : index
    %c0_10 = arith.constant 0 : index
    %10 = vector.load %arg5[%c0_9, %c0_10] : memref<1x32xf32, #tpu.memory_space<vmem>>, vector<1x32xf32>
    %11 = vector.broadcast %10 : vector<1x32xf32> to vector<8x32xf32>
    %12 = arith.addf %9, %11 : vector<8x32xf32>
    %13 = arith.addf %12, %0 : vector<8x32xf32>
    %cst_11 = arith.constant dense<0.000000e+00> : vector<8xf32>
    %14 = vector.multi_reduction <add>, %13, %cst_11 [1] : vector<8x32xf32> to vector<8xf32>
    %15 = vector.shape_cast %14 : vector<8xf32> to vector<8x1xf32>
    %cst_12 = arith.constant 3.200000e+01 : f32
    %16 = vector.broadcast %cst_12 : f32 to vector<8x1xf32>
    %17 = arith.divf %15, %16 : vector<8x1xf32>
    %18 = vector.broadcast %17 : vector<8x1xf32> to vector<8x32xf32>
    %19 = arith.subf %13, %18 : vector<8x32xf32>
    %20 = arith.mulf %19, %19 : vector<8x32xf32>
    %cst_13 = arith.constant dense<0.000000e+00> : vector<8xf32>
    %21 = vector.multi_reduction <add>, %20, %cst_13 [1] : vector<8x32xf32> to vector<8xf32>
    %22 = vector.shape_cast %21 : vector<8xf32> to vector<8x1xf32>
    %cst_14 = arith.constant 3.200000e+01 : f32
    %23 = vector.broadcast %cst_14 : f32 to vector<8x1xf32>
    %24 = arith.divf %22, %23 : vector<8x1xf32>
    %25 = vector.broadcast %17 : vector<8x1xf32> to vector<8x32xf32>
    %26 = arith.subf %13, %25 : vector<8x32xf32>
    %cst_15 = arith.constant 9.99999974E-6 : f32
    %27 = vector.broadcast %cst_15 : f32 to vector<8x1xf32>
    %28 = arith.addf %24, %27 : vector<8x1xf32>
    %29 = math.rsqrt %28 : vector<8x1xf32>
    %30 = vector.broadcast %29 : vector<8x1xf32> to vector<8x32xf32>
    %31 = arith.mulf %26, %30 : vector<8x32xf32>
    %c0_16 = arith.constant 0 : index
    %c0_17 = arith.constant 0 : index
    %32 = vector.load %arg6[%c0_16, %c0_17] : memref<1x32xf32, #tpu.memory_space<vmem>>, vector<1x32xf32>
    %33 = vector.broadcast %32 : vector<1x32xf32> to vector<8x32xf32>
    %34 = arith.mulf %31, %33 : vector<8x32xf32>
    %c0_18 = arith.constant 0 : index
    %c0_19 = arith.constant 0 : index
    %35 = vector.load %arg7[%c0_18, %c0_19] : memref<1x32xf32, #tpu.memory_space<vmem>>, vector<1x32xf32>
    %36 = vector.broadcast %35 : vector<1x32xf32> to vector<8x32xf32>
    %37 = arith.addf %34, %36 : vector<8x32xf32>
    %c0_20 = arith.constant 0 : index
    %c0_21 = arith.constant 0 : index
    %38 = vector.load %arg8[%c0_20, %c0_21] : memref<8x32xf32, #tpu.memory_space<vmem>>, vector<8x32xf32>
    tpu.vector_store %arg8[%c0_20, %c0_21], %37 {strides = array<i32>} : memref<8x32xf32, #tpu.memory_space<vmem>>, vector<8x32xf32>,
    return
  }
  func.func @transform_0(%arg0: i32) -> (i32, i32) {
    %c0_i32 = arith.constant 0 : i32
    %c0_i32_0 = arith.constant 0 : i32
    return %arg0, %c0_i32 : i32, i32
  }
  func.func @transform_1(%arg0: i32) -> (i32, i32) {
    %c0_i32 = arith.constant 0 : i32
    %c0_i32_0 = arith.constant 0 : i32
    %c0_i32_1 = arith.constant 0 : i32
    return %c0_i32, %c0_i32_0 : i32, i32
  }
  func.func @transform_2(%arg0: i32) -> (i32, i32) {
    %c0_i32 = arith.constant 0 : i32
    %c0_i32_0 = arith.constant 0 : i32
    %c0_i32_1 = arith.constant 0 : i32
    return %c0_i32, %c0_i32_0 : i32, i32
  }
  func.func @transform_3(%arg0: i32) -> (i32, i32) {
    %c0_i32 = arith.constant 0 : i32
    %c0_i32_0 = arith.constant 0 : i32
    %c0_i32_1 = arith.constant 0 : i32
    return %c0_i32, %c0_i32_0 : i32, i32
  }
  func.func @transform_4(%arg0: i32) -> (i32, i32) {
    %c0_i32 = arith.constant 0 : i32
    %c0_i32_0 = arith.constant 0 : i32
    %c0_i32_1 = arith.constant 0 : i32
    return %c0_i32, %c0_i32_0 : i32, i32
  }
  func.func @transform_5(%arg0: i32) -> (i32, i32) {
    %c0_i32 = arith.constant 0 : i32
    %c0_i32_0 = arith.constant 0 : i32
    %c0_i32_1 = arith.constant 0 : i32
    return %c0_i32, %c0_i32_0 : i32, i32
  }
  func.func @transform_6(%arg0: i32) -> (i32, i32) {
    %c0_i32 = arith.constant 0 : i32
    %c0_i32_0 = arith.constant 0 : i32
    %c0_i32_1 = arith.constant 0 : i32
    return %c0_i32, %c0_i32_0 : i32, i32
  }
  func.func @transform_7(%arg0: i32) -> (i32, i32) {
    %c0_i32 = arith.constant 0 : i32
    %c0_i32_0 = arith.constant 0 : i32
    return %arg0, %c0_i32 : i32, i32
  }
}

</mosaic_0001>

<bundles_post_ra>
// kernel: encoder_forward.4
= control target key start
LH: loop header
LB: loop body
LE: loop exit
PB: predicated region body
PF: predicated region fallthrough
CT: control target
= control target key end

     0   :  { %s382_s12 = smov 0   ;;  %s414_s0 = inlined_call_operand.vmem [shape: f32[16,32], index: 0, kind: input, shape index: {}]   ;;  %s415_s1 = inlined_call_operand.vmem [shape: f32[32,96], index: 1, kind: input, shape index: {}]   ;;  %s416_s2 = inlined_call_operand.vmem [shape: f32[1,96], index: 2, kind: input, shape index: {}]   ;;  %s417_s3 = inlined_call_operand.vmem [shape: f32[16,96], index: 3, kind: output, shape index: {}]  }
   0x1 LB: > { %s307_s13 = sadd.s32 4294967295, %s357_s12   ;;  %p311_p0 = scmp.ge.s32.totalorder %s357_s12, 1  ;;  %s357_s12 = sphi %s382_s12, %s13_s12  }
   0x2   : > { %p136_p1 = scmp.lt.s32.totalorder %s357_s12, 3 }
   0x4   : > { %p137_p2 = pnand %p311_p0, %p136_p1 }
   0x5   : > { %v167_v0 = vld [vmem:[%s415_s1] sm:$0xff] (!%p137_p2)  ;;  %v168_v1 = vld [vmem:[%s415_s1 + $0x8] sm:$0xff] (!%p137_p2)  ;;  %v169_v2 = vld [vmem:[%s415_s1 + $0x10] sm:$0xff] (!%p137_p2)  ;;  %v359_v3 = vmov (!%p137_p2), 0.0|0.0   ;;  %vm360_vm0 = vmmov (!%p137_p2), 0   ;;  %v361_v6 = vmov (!%p137_p2), 0.0  }
   0x6   : > { %140 = sbr.rel (%p137_p2) target bundleno = 232 (0xe8), region = 32  ;;  %334 = vmatprep.subr.bf16.mxu0 (!%p137_p2), %v359_v3  ;;  %v335_v4 = vpack.c.bf16 (!%p137_p2), %v168_v1, %v167_v0  ;;  %v170_v5 = vld [vmem:[%s415_s1 + $0x18] sm:$0xff] (!%p137_p2)  ;;  %331 = vmatprep.mubr.msk.f32.mxu0 (!%p137_p2), %vm360_vm0, %v361_v6  ;;  %p158_p3 = scmp.lt.s32.totalorder (!%p137_p2), %s307_s13, 1  ;;  %vm178_vm1 = vcmask (!%p137_p2), 261120   ;;  %v314_v9 = vld [vmem:[%s416_s2] ss:$0 sm:$0xff] (!%p137_p2) }
   0x7   : > { %v338_v7 = vpack.c.bf16 (!%p137_p2), %v170_v5, %v169_v2  ;;  %vm252_vm2 = vcmask (!%p137_p2), 785408  }
   0x8   : > { %336 = vmatpush3.bf16.msra.mxu0 (!%p137_p2), %v335_v4 }
   0x9   : > { %337 = vmatprep.subr.bf16.mxu0 (!%p137_p2), %v359_v3 }
   0xc   : > { %339 = vmatpush3.bf16.msra.mxu0 (!%p137_p2), %v338_v7 }
   0xd   : > { %s419_s13 = smov (!%p158_p3, %s307_s13), 1 }
   0xe   : > { %s312_s22 = sshll.u32 %s419_s13, 3 }
   0xf   : > { %s161_s25 = scalar_lea.vmem %s414_s0, %s312_s22  ;;  %s165_s30 = scalar_lea.vmem %s417_s3, %s312_s22 }
  0x10   : > { %v166_v8 = vld [vmem:[%s161_s25] sm:$0xff] }
  0x11   : > { %332 = vmatmul.mubr.msk.f32.vlgmr.msra.gmra.mrb[0].mxu0 %vm178_vm1, %v166_v8 }
  0xe4   : > { %v248_v10 = vpop.f32.mrb[0].mxu0 }
  0xe5   : > { %v249_v11 = vadd.f32 %v314_v9, %v248_v10  ;;  %v333_v12 = vpop.f32.mrb[1].mxu0 }
  0xe7   : > { %253 = vst.msk [vmem:[%s165_s30] sm:$0xff] %vm252_vm2, %v249_v11 }
  0xe8 PF: > { %s13_s12 = sadd.s32 1, %s357_s12  }
  0xe9   : > { %p10_p4 = scmp.ge.s32.totalorder %s13_s12, 4  }
  0xeb   :  { %12 = sbr.rel (!%p10_p4) target bundleno = 1 (0x1), region = 62 }

// kernel: encoder_forward.6
= control target key start
LH: loop header
LB: loop body
LE: loop exit
PB: predicated region body
PF: predicated region fallthrough
CT: control target
= control target key end

     0   :  { %s543_s21 = smov 0   ;;  %s593_s0 = inlined_call_operand.vmem [shape: f32[16,32], index: 0, kind: input, shape index: {}]   ;;  %s594_s1 = inlined_call_operand.vmem [shape: f32[32,32], index: 1, kind: input, shape index: {}]   ;;  %s595_s2 = inlined_call_operand.vmem [shape: f32[1,32], index: 2, kind: input, shape index: {}]   ;;  %s596_s3 = inlined_call_operand.vmem [shape: f32[16,32], index: 3, kind: input, shape index: {}]   ;;  %s597_s4 = inlined_call_operand.vmem [shape: f32[1,32], index: 4, kind: input, shape index: {}]   ;;  %s598_s5 = inlined_call_operand.vmem [shape: f32[1,32], index: 5, kind: input, shape index: {}]   ;;  %s599_s6 = inlined_call_operand.vmem [shape: f32[16,32], index: 6, kind: output, shape index: {}]  }
   0x1 LB: > { %s448_s22 = sadd.s32 4294967295, %s503_s21   ;;  %p452_p0 = scmp.ge.s32.totalorder %s503_s21, 1  ;;  %s503_s21 = sphi %s543_s21, %s16_s21  }
   0x2   : > { %p220_p1 = scmp.lt.s32.totalorder %s503_s21, 3 }
   0x4   : > { %p221_p2 = pnand %p452_p0, %p220_p1 }
   0x5   : > { %v265_v0 = vld [vmem:[%s594_s1] sm:$0xff] (!%p221_p2)  ;;  %v266_v1 = vld [vmem:[%s594_s1 + $0x8] sm:$0xff] (!%p221_p2)  ;;  %v267_v2 = vld [vmem:[%s594_s1 + $0x10] sm:$0xff] (!%p221_p2)  ;;  %v505_v3 = vmov (!%p221_p2), 0.0|0.0   ;;  %vm506_vm0 = vmmov (!%p221_p2), 0   ;;  %v507_v6 = vmov (!%p221_p2), 0.0  }
   0x6   : > { %224 = sbr.rel (%p221_p2) target bundleno = 547 (0x223), region = 44  ;;  %478 = vmatprep.subr.bf16.mxu0 (!%p221_p2), %v505_v3  ;;  %v479_v4 = vpack.c.bf16 (!%p221_p2), %v266_v1, %v265_v0  ;;  %v268_v5 = vld [vmem:[%s594_s1 + $0x18] sm:$0xff] (!%p221_p2)  ;;  %475 = vmatprep.mubr.msk.f32.mxu0 (!%p221_p2), %vm506_vm0, %v507_v6  ;;  %p252_p3 = scmp.lt.s32.totalorder (!%p221_p2), %s448_s22, 1  ;;  %vm276_vm1 = vcmask (!%p221_p2), 261120   ;;  %v456_v9 = vld [vmem:[%s595_s2] ss:$0 sm:$0xff] (!%p221_p2) }
   0x7   : > { %v482_v7 = vpack.c.bf16 (!%p221_p2), %v268_v5, %v267_v2  ;;  %v458_v25 = vld [vmem:[%s597_s4] ss:$0 sm:$0xff] (!%p221_p2) }
   0x8   : > { %480 = vmatpush3.bf16.msra.mxu0 (!%p221_p2), %v479_v4  ;;  %v459_v27 = vld [vmem:[%s598_s5] ss:$0 sm:$0xff] (!%p221_p2) }
   0x9   : > { %481 = vmatprep.subr.bf16.mxu0 (!%p221_p2), %v505_v3 }
   0xc   : > { %483 = vmatpush3.bf16.msra.mxu0 (!%p221_p2), %v482_v7 }
   0xd   : > { %s601_s22 = smov (!%p252_p3, %s448_s22), 1 }
   0xe   : > { %s563_s7 = sshll.u32 %s601_s22, 3 }
   0xf   : > { %s255_s10 = scalar_lea.vmem %s593_s0, %s563_s7  ;;  %s259_s13 = scalar_lea.vmem %s596_s3, %s563_s7 }
  0x10   : > { %v264_v8 = vld [vmem:[%s255_s10] sm:$0xff]  ;;  %s263_s23 = scalar_lea.vmem %s599_s6, %s563_s7 }
  0x11   : > { %476 = vmatmul.mubr.msk.f32.vlgmr.msra.gmra.mrb[0].mxu0 %vm276_vm1, %v264_v8  ;;  %v350_v11 = vld [vmem:[%s259_s13] sm:$0xff] }
  0xe4   : > { %v346_v10 = vpop.f32.mrb[0].mxu0 }
  0xe5   : > { %v347_v12 = vadd.f32 %v456_v9, %v346_v10  ;;  %v477_v13 = vpop.f32.mrb[1].mxu0 }
  0xe7   : > { %v351_v14 = vadd.f32 %v350_v11, %v347_v12 }
  0xe9   : > { %v352_v15 = vsel %vm276_vm1, %v351_v14, 0.0 }
  0xea   : > { %353 = vadd.xlane.f32.xlu0 %v352_v15 }
 0x177   : > { %v354_v16 = vpop.xlane.xlu0 %353 }
 0x178   : > { %v356_v17 = vmul.f32 0.03125, %v354_v16 }
 0x17a   : > { %v357_v18 = vsub.f32 %v351_v14, %v356_v17 }
 0x17c   : > { %v358_v19 = vmul.f32 %v357_v18, %v357_v18 }
 0x17e   : > { %v359_v20 = vsel %vm276_vm1, %v358_v19, 0.0 }
 0x17f   : > { %360 = vadd.xlane.f32.xlu0 %v359_v20 }
 0x20c   : > { %v361_v21 = vpop.xlane.xlu0 %360 }
 0x20d   : > { %v362_v22 = vmul.f32 0.03125, %v361_v21 }
 0x20f   : > { %v363_v23 = vadd.f32 1e-05, %v362_v22 }
 0x211   : > { %495 = vrsqrt.f32 %v363_v23 }
 0x21b   : > { %v496_v24 = vpop.eup %495 }
 0x21c   : > { %v365_v26 = vmul.f32 %v496_v24, %v357_v18 }
 0x21e   : > { %v373_v28 = vmul.f32 %v458_v25, %v365_v26 }
 0x220   : > { %v381_v29 = vadd.f32 %v459_v27, %v373_v28 }
 0x222   : > { %382 = vst.msk [vmem:[%s263_s23] sm:$0xff] %vm276_vm1, %v381_v29 }
 0x223 PF: > { %s16_s21 = sadd.s32 1, %s503_s21  }
 0x224   : > { %p13_p4 = scmp.ge.s32.totalorder %s16_s21, 4  }
 0x226   :  { %15 = sbr.rel (!%p13_p4) target bundleno = 1 (0x1), region = 77 }

// kernel: encoder_forward.5
= control target key start
LH: loop header
LB: loop body
LE: loop exit
PB: predicated region body
PF: predicated region fallthrough
CT: control target
= control target key end

     0   :  { %s1098_s12 = smov 0   ;;  %s1175_s0 = inlined_call_operand.vmem [shape: f32[8,8,8], index: 0, kind: input, shape index: {}]   ;;  %s1176_s1 = inlined_call_operand.vmem [shape: f32[8,8,8], index: 1, kind: input, shape index: {}]   ;;  %s1177_s2 = inlined_call_operand.vmem [shape: f32[8,8,8], index: 2, kind: input, shape index: {}]   ;;  %s1178_s3 = inlined_call_operand.vmem [shape: f32[8,8,8], index: 3, kind: output, shape index: {}]  }
   0x1 LB: > { %s959_s13 = sadd.s32 4294967295, %s1074_s12   ;;  %p963_p0 = scmp.ge.s32.totalorder %s1074_s12, 1  ;;  %s1074_s12 = sphi %s1098_s12, %s13_s12  }
   0x2   : > { %p160_p1 = scmp.lt.s32.totalorder %s1074_s12, 3 }
   0x4   : > { %p161_p2 = pnand %p963_p0, %p160_p1 }
   0x5   : > { %s964_s14 = sshll.u32 (!%p161_p2), %s959_s13, 2  ;;  %v1076_v0 = vmov (!%p161_p2), 0.0   ;;  %vm1077_vm0 = vmmov (!%p161_p2), 0   ;;  %vm230_vm1 = vcmask (!%p161_p2), 64512  }
   0x6   : > { %164 = sbr.rel (%p161_p2) target bundleno = 769 (0x301), region = 32  ;;  %1002 = vmatprep.subr.mxu0 (!%p161_p2), %v1076_v0  ;;  %p195_p3 = scmp.lt.s32.totalorder (!%p161_p2), %s964_s14, 7  ;;  %1004 = vmatprep.mubr.msk.f32.mxu0 (!%p161_p2), %vm1077_vm0, %v1076_v0 }
   0x7   : > { %1007 = vmatprep.subr.mxu1 (!%p161_p2), %v1076_v0  ;;  %1009 = vmatprep.mubr.msk.f32.mxu1 (!%p161_p2), %vm1077_vm0, %v1076_v0 }
   0xd   : > { %s1180_s14 = smov (!%p195_p3, %s964_s14), 7 }
   0xe   : > { %s1112_s15 = sshll.u32 %s1180_s14, 3 }
   0xf   : > { %s204_s18 = scalar_lea.vmem %s1176_s1, %s1112_s15  ;;  %s198_s21 = scalar_lea.vmem %s1175_s0, %s1112_s15 }
  0x10   : > { %v222_v1 = vld [vmem:[%s204_s18] sm:$0xff]  ;;  %v223_v2 = vld [vmem:[%s204_s18 + $0x8] sm:$0xff]  ;;  %v224_v5 = vld [vmem:[%s204_s18 + $0x10] sm:$0xff]  ;;  %s210_s24 = scalar_lea.vmem %s1177_s2, %s1112_s15  ;;  %s216_s27 = scalar_lea.vmem %s1178_s3, %s1112_s15 }
  0x11   : > { %1003 = vmatpush3.xpose.msk.msra.mxu0 %vm230_vm1, %v222_v1  ;;  %v218_v3 = vld [vmem:[%s198_s21] sm:$0xff]  ;;  %1008 = vmatpush3.xpose.msk.msra.mxu1 %vm230_vm1, %v223_v2  ;;  %v219_v4 = vld [vmem:[%s198_s21 + $0x8] sm:$0xff]  ;;  %v225_v6 = vld [vmem:[%s204_s18 + $0x18] sm:$0xff] }
  0x12   : > { %1012 = vmatprep.subr.mxu0 %v1076_v0  ;;  %1017 = vmatprep.subr.mxu1 %v1076_v0  ;;  %v220_v7 = vld [vmem:[%s198_s21 + $0x10] sm:$0xff]  ;;  %v221_v8 = vld [vmem:[%s198_s21 + $0x18] sm:$0xff]  ;;  %v226_v45 = vld [vmem:[%s210_s24] sm:$0xff] }
  0x13   : > { %v227_v46 = vld [vmem:[%s210_s24 + $0x8] sm:$0xff]  ;;  %v228_v53 = vld [vmem:[%s210_s24 + $0x10] sm:$0xff]  ;;  %v229_v57 = vld [vmem:[%s210_s24 + $0x18] sm:$0xff] }
  0x14   : > { %1005 = vmatmul.mubr.msk.f32.vlgmr.msra.gmra.mrb[0].mxu0 %vm230_vm1, %v218_v3  ;;  %1010 = vmatmul.mubr.msk.f32.vlgmr.msra.gmra.mrb[0].mxu1 %vm230_vm1, %v219_v4 }
  0x15   : > { %1013 = vmatpush3.xpose.msk.msra.mxu0 %vm230_vm1, %v224_v5  ;;  %1014 = vmatprep.mubr.msk.f32.mxu0 %vm1077_vm0, %v1076_v0 }
  0x16   : > { %1018 = vmatpush3.xpose.msk.msra.mxu1 %vm230_vm1, %v225_v6  ;;  %1019 = vmatprep.mubr.msk.f32.mxu1 %vm1077_vm0, %v1076_v0 }
  0x17   : > { %1022 = vmatprep.subr.mxu0 %v1076_v0  ;;  %1027 = vmatprep.subr.mxu1 %v1076_v0 }
  0x18   : > { %1015 = vmatmul.mubr.msk.f32.vlgmr.msra.gmra.mrb[2].mxu0 %vm230_vm1, %v220_v7 }
  0x19   : > { %1020 = vmatmul.mubr.msk.f32.vlgmr.msra.gmra.mrb[2].mxu1 %vm230_vm1, %v221_v8  ;;  %1024 = vmatprep.mubr.msk.f32.mxu0 %vm1077_vm0, %v1076_v0 }
  0x1a   : > { %1029 = vmatprep.mubr.msk.f32.mxu1 %vm1077_vm0, %v1076_v0  ;;  %1023 = vmatpush3.msra.mxu0 %v226_v45 }
  0x1b   : > { %1032 = vmatprep.subr.mxu0 %v1076_v0  ;;  %1028 = vmatpush3.msra.mxu1 %v227_v46 }
  0x1c   : > { %1037 = vmatprep.subr.mxu1 %v1076_v0 }
  0xe7   : > { %v303_v9 = vpop.f32.mrb[0].mxu0  ;;  %v379_v10 = vpop.f32.mrb[0].mxu1 }
  0xe8   : > { %v535_v11 = vmul.f32 0.35355338, %v303_v9  ;;  %v1006_v12 = vpop.f32.mrb[1].mxu0  ;;  %v536_v13 = vmul.f32 0.35355338, %v379_v10  ;;  %v1011_v14 = vpop.f32.mrb[1].mxu1 }
  0xea   : > { %v539_v15 = vsel %vm230_vm1, %v535_v11, -inf  ;;  %v542_v20 = vsel %vm230_vm1, %v536_v13, -inf }
  0xeb   : > { %540 = vmax.xlane.f32.xlu0 %v539_v15  ;;  %v455_v16 = vpop.f32.mrb[2].mxu0 }
  0xec   : > { %v537_v17 = vmul.f32 0.35355338, %v455_v16  ;;  %v1016_v18 = vpop.f32.mrb[3].mxu0  ;;  %v531_v19 = vpop.f32.mrb[2].mxu1 }
  0xed   : > { %v538_v21 = vmul.f32 0.35355338, %v531_v19  ;;  %v1021_v22 = vpop.f32.mrb[3].mxu1 }
  0xee   : > { %v545_v23 = vsel %vm230_vm1, %v537_v17, -inf }
  0xef   : > { %543 = vmax.xlane.f32.xlu0 %v542_v20  ;;  %546 = vmax.xlane.f32.xlu1 %v545_v23  ;;  %v548_v24 = vsel %vm230_vm1, %v538_v21, -inf }
  0xf3   : > { %549 = vmax.xlane.f32.xlu1 %v548_v24 }
 0x178   : > { %v541_v25 = vpop.xlane.xlu0 %540 }
 0x179   : > { %v551_v26 = vsub.f32 %v535_v11, %v541_v25 }
 0x17b   : > { %v555_v27 = vmul.f32 1.442695, %v551_v26 }
 0x17c   : > { %v544_v28 = vpop.xlane.xlu0 %543  ;;  %v547_v29 = vpop.xlane.xlu1 %546 }
 0x17d   : > { %1052 = vpow2.f32 %v555_v27  ;;  %v552_v30 = vsub.f32 %v536_v13, %v544_v28  ;;  %v553_v31 = vsub.f32 %v537_v17, %v547_v29 }
 0x17f   : > { %v557_v32 = vmul.f32 1.442695, %v552_v30  ;;  %v559_v33 = vmul.f32 1.442695, %v553_v31 }
 0x180   : > { %v550_v34 = vpop.xlane.xlu1 %549 }
 0x181   : > { %1054 = vpow2.f32 %v557_v32  ;;  %v554_v35 = vsub.f32 %v538_v21, %v550_v34 }
 0x182   : > { %1056 = vpow2.f32 %v559_v33 }
 0x183   : > { %v561_v36 = vmul.f32 1.442695, %v554_v35 }
 0x185   : > { %1058 = vpow2.f32 %v561_v36 }
 0x187   : > { %v1053_v37 = vpop.eup %1052 }
 0x188   : > { %v563_v38 = vsel %vm230_vm1, %v1053_v37, 0.0 }
 0x189   : > { %564 = vadd.xlane.f32.xlu0 %v563_v38 }
 0x18b   : > { %v1055_v39 = vpop.eup %1054 }
 0x18c   : > { %v1057_v40 = vpop.eup %1056  ;;  %v566_v41 = vsel %vm230_vm1, %v1055_v39, 0.0 }
 0x18d   : > { %567 = vadd.xlane.f32.xlu1 %v566_v41  ;;  %v569_v42 = vsel %vm230_vm1, %v1057_v40, 0.0 }
 0x18e   : > { %570 = vadd.xlane.f32.xlu0 %v569_v42 }
 0x18f   : > { %v1059_v43 = vpop.eup %1058 }
 0x190   : > { %v572_v44 = vsel %vm230_vm1, %v1059_v43, 0.0 }
 0x191   : > { %573 = vadd.xlane.f32.xlu1 %v572_v44 }
 0x216   : > { %v565_v47 = vpop.xlane.xlu0 %564 }
 0x217   : > { %1060 = vrcp.f32 %v565_v47 }
 0x21a   : > { %v568_v48 = vpop.xlane.xlu1 %567 }
 0x21b   : > { %v571_v49 = vpop.xlane.xlu0 %570  ;;  %1062 = vrcp.f32 %v568_v48 }
 0x21c   : > { %1064 = vrcp.f32 %v571_v49 }
 0x21e   : > { %v574_v50 = vpop.xlane.xlu1 %573 }
 0x21f   : > { %1066 = vrcp.f32 %v574_v50 }
 0x221   : > { %v1061_v51 = vpop.eup %1060 }
 0x222   : > { %v579_v52 = vmul.f32 %v1061_v51, %v1053_v37 }
 0x224   : > { %1025 = vmatmul.mubr.msk.f32.vlgmr.msra.gmra.mrb[4].mxu0 %vm230_vm1, %v579_v52 }
 0x225   : > { %v1063_v54 = vpop.eup %1062  ;;  %1033 = vmatpush3.msra.mxu0 %v228_v53  ;;  %1034 = vmatprep.mubr.msk.f32.mxu0 %vm1077_vm0, %v1076_v0 }
 0x226   : > { %v1065_v55 = vpop.eup %1064  ;;  %v580_v56 = vmul.f32 %v1063_v54, %v1055_v39 }
 0x227   : > { %v581_v58 = vmul.f32 %v1065_v55, %v1057_v40 }
 0x228   : > { %1030 = vmatmul.mubr.msk.f32.vlgmr.msra.gmra.mrb[4].mxu1 %vm230_vm1, %v580_v56 }
 0x229   : > { %v1067_v59 = vpop.eup %1066  ;;  %1035 = vmatmul.mubr.msk.f32.vlgmr.msra.gmra.mrb[6].mxu0 %vm230_vm1, %v581_v58  ;;  %1038 = vmatpush3.msra.mxu1 %v229_v57 }
 0x22a   : > { %v582_v60 = vmul.f32 %v1067_v59, %v1059_v43  ;;  %1039 = vmatprep.mubr.msk.f32.mxu1 %vm1077_vm0, %v1076_v0 }
 0x22c   : > { %1040 = vmatmul.mubr.msk.f32.vlgmr.msra.gmra.mrb[6].mxu1 %vm230_vm1, %v582_v60 }
 0x2f7   : > { %v652_v61 = vpop.f32.mrb[4].mxu0 }
 0x2f8   : > { %875 = vst.msk [vmem:[%s216_s27] sm:$0xff] %vm230_vm1, %v652_v61  ;;  %v1026_v62 = vpop.f32.mrb[5].mxu0 }
 0x2fb   : > { %v725_v63 = vpop.f32.mrb[4].mxu1 }
 0x2fc   : > { %876 = vst.msk [vmem:[%s216_s27 + $0x8] sm:$0xff] %vm230_vm1, %v725_v63  ;;  %v798_v1 = vpop.f32.mrb[6].mxu0  ;;  %v1031_v2 = vpop.f32.mrb[5].mxu1 }
 0x2fd   : > { %877 = vst.msk [vmem:[%s216_s27 + $0x10] sm:$0xff] %vm230_vm1, %v798_v1  ;;  %v1036_v3 = vpop.f32.mrb[7].mxu0 }
 0x2ff   : > { %v871_v4 = vpop.f32.mrb[6].mxu1 }
 0x300   : > { %878 = vst.msk [vmem:[%s216_s27 + $0x18] sm:$0xff] %vm230_vm1, %v871_v4  ;;  %v1041_v0 = vpop.f32.mrb[7].mxu1 }
 0x301 PF: > { %s13_s12 = sadd.s32 1, %s1074_s12  }
 0x302   : > { %p10_p4 = scmp.ge.s32.totalorder %s13_s12, 4  }
 0x304   :  { %12 = sbr.rel (!%p10_p4) target bundleno = 1 (0x1), region = 68 }

// kernel: encoder_forward.7
= control target key start
LH: loop header
LB: loop body
LE: loop exit
PB: predicated region body
PF: predicated region fallthrough
CT: control target
= control target key end

     0   :  { %12 = vsyncpa [#allocation3], 0  ;;  %s937_s0 = inlined_call_operand.vmem [shape: f32[16,32], index: 0, kind: input, shape index: {}]   ;;  %s938_s1 = inlined_call_operand.vmem [shape: f32[32,64], index: 1, kind: input, shape index: {}]   ;;  %s939_s2 = inlined_call_operand.vmem [shape: f32[1,64], index: 2, kind: input, shape index: {}]   ;;  %s940_s3 = inlined_call_operand.vmem [shape: f32[64,32], index: 3, kind: input, shape index: {}]   ;;  %s941_s4 = inlined_call_operand.vmem [shape: f32[1,32], index: 4, kind: input, shape index: {}]   ;;  %s942_s5 = inlined_call_operand.vmem [shape: f32[1,32], index: 5, kind: input, shape index: {}]   ;;  %s943_s6 = inlined_call_operand.vmem [shape: f32[1,32], index: 6, kind: input, shape index: {}]   ;;  %s944_s7 = inlined_call_operand.hbm [shape: f32[16,32], index: 7, kind: output, shape index: {}]  }
   0x1   :  { %14 = vsyncpa [#allocation3 + $0x1], 0  ;;  %s785_s24 = smov 0   ;;  %s787_s25 = smov 0  }
   0x2   :  { %s789_s26 = smov 0   ;;  %s791_s27 = smov 0  }
   0x3 LB: > { %s806_s28 = sadd.s32 4294967295, %s739_s27   ;;  %s555_s29 = sadd.s32 4294967294, %s739_s27   ;;  %s739_s27 = sphi %s791_s27, %s950_s27   ;;  %s735_s26 = sphi %s789_s26, %s949_s26   ;;  %s731_s25 = sphi %s787_s25, %s948_s25   ;;  %s727_s24 = sphi %s785_s24, %s947_s24  }
   0x4   : > { %s810_s30 = sadd.s32 1, %s739_s27   ;;  %s179_s8 = sadd.s32 1, %s735_s26 }
   0x5   : > { %s176_s9 = ssub.s32 %s739_s27, %s810_s30  ;;  %p189_p0 = scmp.ne.s32.totalorder %s735_s26, %s731_s25 }
   0x6   : > { %p177_p1 = scmp.eq.s32.totalorder %s176_s9, 0  ;;  %p190_p2 = scmp.eq.s32.totalorder %s806_s28, 1 }
   0x7   : > { %p195_p3 = scmp.ne.s32.totalorder %s731_s25, %s727_s24  ;;  %p196_p4 = scmp.eq.s32.totalorder %s555_s29, 1 }
   0x8   : > { %s821_s10 = scalar_select %p177_p1, %s735_s26, %s179_s8  }
   0x9   : > { %p823_p5 = por %p190_p2, %p189_p0  ;;  %p827_p6 = por %p196_p4, %p195_p3 }
   0xa   : > { %p558_p7 = scmp.ge.s32.totalorder %s739_s27, 1  ;;  %p239_p8 = scmp.lt.s32.totalorder %s739_s27, 3 }
   0xc   : > { %p240_p9 = pnand %p558_p7, %p239_p8 }
   0xd   : > { %v275_v0 = vld [vmem:[%s938_s1] sm:$0xff] (!%p240_p9)  ;;  %v276_v1 = vld [vmem:[%s938_s1 + $0x8] sm:$0xff] (!%p240_p9)  ;;  %v277_v2 = vld [vmem:[%s938_s1 + $0x10] sm:$0xff] (!%p240_p9)  ;;  %v741_v3 = vmov (!%p240_p9), 0.0|0.0   ;;  %vm742_vm0 = vmmov (!%p240_p9), 0   ;;  %v743_v6 = vmov (!%p240_p9), 0.0  }
   0xe   : > { %243 = sbr.rel (%p240_p9) target bundleno = 785 (0x311), region = 48  ;;  %615 = vmatprep.subr.bf16.mxu0 (!%p240_p9), %v741_v3  ;;  %v616_v4 = vpack.c.bf16 (!%p240_p9), %v276_v1, %v275_v0  ;;  %v278_v5 = vld [vmem:[%s938_s1 + $0x18] sm:$0xff] (!%p240_p9)  ;;  %593 = vmatprep.mubr.msk.f32.mxu0 (!%p240_p9), %vm742_vm0, %v743_v6  ;;  %p270_p10 = scmp.lt.s32.totalorder (!%p240_p9), %s806_s28, 1  ;;  %v361_v7 = vld [vmem:[%s940_s3] sm:$0xff] (!%p240_p9)  ;;  %v362_v8 = vld [vmem:[%s940_s3 + $0x8] sm:$0xff] (!%p240_p9)  ;;  %vm286_vm1 = vcmask (!%p240_p9), 261120  }
   0xf   : > { %621 = vmatprep.subr.bf16.mxu1 (!%p240_p9), %v741_v3  ;;  %v622_v9 = vpack.c.bf16 (!%p240_p9), %v362_v8, %v361_v7  ;;  %v363_v10 = vld [vmem:[%s940_s3 + $0x10] sm:$0xff] (!%p240_p9)  ;;  %v364_v11 = vld [vmem:[%s940_s3 + $0x18] sm:$0xff] (!%p240_p9)  ;;  %612 = vmatprep.mubr.msk.f32.mxu1 (!%p240_p9), %vm742_vm0, %v743_v6  ;;  %v619_v12 = vpack.c.bf16 (!%p240_p9), %v278_v5, %v277_v2  ;;  %v365_v14 = vld [vmem:[%s940_s3 + $0x20] sm:$0xff] (!%p240_p9)  ;;  %vm376_vm2 = vcmask (!%p240_p9), 523264   ;;  %s267_s18 = sand.u32 (!%p240_p9), 1, %s731_s25   ;;  %s568_s29 = sshll.u32 (!%p240_p9), %s806_s28, 7 }
  0x10   : > { %617 = vmatpush3.bf16.msra.mxu0 (!%p240_p9), %v616_v4  ;;  %v625_v13 = vpack.c.bf16 (!%p240_p9), %v364_v11, %v363_v10  ;;  %v366_v15 = vld [vmem:[%s940_s3 + $0x28] sm:$0xff] (!%p240_p9)  ;;  %v367_v18 = vld [vmem:[%s940_s3 + $0x30] sm:$0xff] (!%p240_p9)  ;;  %v368_v19 = vld [vmem:[%s940_s3 + $0x38] sm:$0xff] (!%p240_p9)  ;;  %s559_s19 = sshll.u32 (!%p240_p9), %s267_s18, 3 }
  0x11   : > { %618 = vmatprep.subr.bf16.mxu0 (!%p240_p9), %v741_v3  ;;  %623 = vmatpush3.bf16.msra.mxu1 (!%p240_p9), %v622_v9  ;;  %v628_v17 = vpack.c.bf16 (!%p240_p9), %v366_v15, %v365_v14  ;;  %v631_v20 = vpack.c.bf16 (!%p240_p9), %v368_v19, %v367_v18  ;;  %v561_v21 = vld [vmem:[%s939_s2] ss:$0 sm:$0xff] (!%p240_p9)  ;;  %s269_s8 = scalar_lea.vmem (!%p240_p9), [#allocation2], %s559_s19 }
  0x12   : > { %624 = vmatprep.subr.bf16.mxu1 (!%p240_p9), %v741_v3  ;;  %v563_v26 = vld [vmem:[%s941_s4] ss:$0 sm:$0xff] (!%p240_p9)  ;;  %s496_s9 = sshll.u32 (!%p240_p9), %s269_s8, 4  ;;  %s896_s9 = int_to_ptr.vmem [resolvable:$true] %s496_s9 }
  0x13   : > { %v565_v41 = vld [vmem:[%s942_s5] ss:$0 sm:$0xff] (!%p240_p9)  ;;  %s677_s17 = scalar_lea.vmem (!%p240_p9), %s896_s9, 128 }
  0x14   : > { %620 = vmatpush3.bf16.msra.mxu0 (!%p240_p9), %v619_v12  ;;  %v566_v43 = vld [vmem:[%s943_s6] ss:$0 sm:$0xff] (!%p240_p9)  ;;  %p678_p11 = scmp.ne.s32.totalorder (!%p240_p9), %s896_s9, %s677_s17 }
  0x15   : > { %s271_s15 = scalar_select %p270_p10, %s806_s28, 1  ;;  %626 = vmatpush3.bf16.msra.mxu1 %v625_v13 }
  0x16   : > { %627 = vmatprep.subr.bf16.mxu1 %v741_v3  ;;  %p679_p12 = pnand %p678_p11, %p823_p5  ;;  %s744_s28 = smov [#allocation2]  }
  0x17   : > { %s560_s16 = sshll.u32 %s271_s15, 3  ;;  %s894_s15 = scalar_lea.hbm %s944_s7, %s568_s29 }
  0x18   : > { %s273_s23 = scalar_lea.vmem %s937_s0, %s560_s16  ;;  %s483_s16 = scalar_lea.sflag [#allocation3], %s267_s18 }
  0x19   : > { %v274_v16 = vld [vmem:[%s273_s23] sm:$0xff]  ;;  %629 = vmatpush3.bf16.msra.mxu1 %v628_v17  ;;  %p680_p13 = pneg %p679_p12  ;;  %s681_s19 = sshll.u32 %s744_s28, 4  ;;  %s682_s19 = int_to_ptr.vmem [resolvable:$false] %s681_s19 }
  0x1a   : > { %594 = vmatmul.mubr.msk.f32.vlgmr.msra.gmra.mrb[0].mxu0 %vm286_vm1, %v274_v16  ;;  %630 = vmatprep.subr.bf16.mxu1 %v741_v3  ;;  %s683_s20 = scalar_lea.vmem %s682_s19, 256  ;;  %p684_p0 = scmp.lt.s32.totalorder %s896_s9, %s682_s19 }
  0x1b   : > { %p685_p1 = scmp.lt.s32.totalorder %s683_s20, %s677_s17 }
  0x1d   : > { %632 = vmatpush3.bf16.msra.mxu1 %v631_v20  ;;  %p686_p2 = por %p685_p1, %p684_p0 }
  0x1f   : > { %p687_p3 = pnand %p686_p2, %p680_p13 }
  0xed   : > { %v356_v22 = vpop.f32.mrb[0].mxu0 }
  0xee   : > { %v357_v23 = vadd.f32 %v561_v21, %v356_v22  ;;  %v595_v24 = vpop.f32.mrb[1].mxu0 }
  0xf0   : > { %v360_v25 = vmax.f32 %v357_v23, 0.0 }
  0xf2   : > { %613 = vmatmul.mubr.msk.f32.vlgmr.msra.gmra.mrb[0].mxu1 %vm376_vm2, %v360_v25 }
 0x1c5   : > { %v446_v27 = vpop.f32.mrb[0].mxu1 }
 0x1c6   : > { %v447_v28 = vadd.f32 %v563_v26, %v446_v27  ;;  %v614_v29 = vpop.f32.mrb[1].mxu1 }
 0x1c8   : > { %v450_v30 = vadd.f32 %v447_v28, %v274_v16 }
 0x1ca   : > { %v451_v31 = vsel %vm286_vm1, %v450_v30, 0.0 }
 0x1cb   : > { %452 = vadd.xlane.f32.xlu0 %v451_v31 }
 0x258   : > { %v453_v32 = vpop.xlane.xlu0 %452 }
 0x259   : > { %v455_v33 = vmul.f32 0.03125, %v453_v32 }
 0x25b   : > { %v456_v34 = vsub.f32 %v450_v30, %v455_v33 }
 0x25d   : > { %v457_v35 = vmul.f32 %v456_v34, %v456_v34 }
 0x25f   : > { %v458_v36 = vsel %vm286_vm1, %v457_v35, 0.0 }
 0x260   : > { %459 = vadd.xlane.f32.xlu0 %v458_v36 }
 0x2ed   : > { %v460_v37 = vpop.xlane.xlu0 %459 }
 0x2ee   : > { %v461_v38 = vmul.f32 0.03125, %v460_v37 }
 0x2f0   : > { %v462_v39 = vadd.f32 1e-05, %v461_v38 }
 0x2f2   : > { %675 = vrsqrt.f32 %v462_v39 }
 0x2fc   : > { %v676_v40 = vpop.eup %675 }
 0x2fd   : > { %v464_v42 = vmul.f32 %v676_v40, %v456_v34 }
 0x2ff   : > { %v472_v44 = vmul.f32 %v565_v41, %v464_v42 }
 0x301   : > { %v480_v45 = vadd.f32 %v566_v43, %v472_v44 }
 0x303   : > { %481 = vst.msk [vmem:[%s269_s8] sm:$0xff] %vm286_vm1, %v480_v45 }
 0x304   : > { %690 = shalt.err (!%p687_p3)
}
 0x305   : > { %s691_s18 = scalar_lea.hbm %s894_s15, 128  ;;  %s695_s23 = scalar_lea.hbm %s944_s7, 256 }
 0x306   : > { %p692_p4 = scmp.ne.s32.totalorder %s894_s15, %s691_s18  ;;  %p696_p9 = scmp.lt.u32.totalorder %s894_s15, %s944_s7 }
 0x307   : > { %p697_p10 = scmp.lt.u32.totalorder %s695_s23, %s691_s18  ;;  %p699_p12 = scmp.lt.u32.totalorder %s691_s18, %s894_s15 }
 0x308   : > { %p693_p7 = pnand %p692_p4, %p823_p5 }
 0x309   : > { %p698_p11 = por %p697_p10, %p696_p9 }
 0x30a   : > { %p694_p8 = pneg %p693_p7 }
 0x30b   : > { %p700_p13 = por %p699_p12, %p698_p11 }
 0x30d   : > { %p701_p0 = pnand %p700_p13, %p694_p8 }
 0x30f   : > { %704 = shalt.err (!%p701_p0)
}
 0x310   : > { %633 = dma.vmem_to_hbm [thread:$0]  (%p823_p5), %s896_s9, 128, %s894_s15, %s483_s16  }
 0x311 PF: > { %p639_p1 = scmp.ge.s32.totalorder %s739_s27, 2  ;;  %s508_s13 = sand.u32 1, %s727_s24  }
 0x312   : > { %s509_s14 = scalar_lea.sflag [#allocation3], %s508_s13 }
 0x313   : > { %p636_p2 = pnand %p639_p1, %p827_p6 }
 0x315   : > { %722 = dma.done.wait (!%p636_p2), %s509_s14, 128  }
 0x316   : > { %724 = vsyncadd (!%p636_p2), %s509_s14, 4294967168  ;;  %p17_p3 = scmp.ge.s32.totalorder %s810_s30, 4   ;;  %s947_s24 = smov %s731_s25 }
 0x317   : > { %s948_s25 = smov %s735_s26  ;;  %s949_s26 = smov %s821_s10 }
 0x318   : > { %s950_s27 = smov %s810_s30  ;;  %19 = sbr.rel (!%p17_p3) target bundleno = 3 (0x3), region = 83 }
 0x31f   :  { %514 = vsyncpa [#allocation3], 1 }
 0x320   :  { %516 = vsyncpa [#allocation3 + $0x1], 1 }

</bundles_post_ra>
